<compile_context>
chip_gen: v5e
topology: v5e:2x2
jax: 0.10.0
libtpu: 0.0.40
codegen_flags: <defaults>
</compile_context>

<pallas_src>
import math
from functools import partial

import jax
import jax.numpy as jnp
from jax.experimental import pallas as pl
from jax.experimental.pallas import tpu as pltpu

# ----------------------------- config (small, deterministic) ----------------
B = 2          # batch
NQ = 8         # query tokens
NK = 16        # key/value tokens
C = 32         # embedding_dim (= internal_dim, downsample_rate=1)
H = 4          # num_heads
DH = C // H    # head dim


# ------------------------------- Pallas kernel ------------------------------
def attention_kernel(tok_ref, w_ref, b_ref, out_ref,
                     *, num_heads, head_dim, nq, nk):
    bb = tok_ref.shape[0]
    c = num_heads * head_dim
    tpb = nq + 2 * nk                     # tokens per batch block: [q | k | v]

    w = w_ref[...]                        # (C, 4C) bf16: [Wq*s | Wk | Wv | Wo]
    bias = b_ref[...]                     # (1, 4C) f32:  [bq*s |  0 |  0 | bv@Wo+bo]

    # Fused q/k/v(/o) projection: one bf16 MXU pass of ALL token rows against
    # the packed slab, f32 accumulation. Leading-dim reshape is layout-neutral.
    tok = tok_ref[...].reshape(bb * tpb, c)
    proj = jnp.dot(tok, w, preferred_element_type=jnp.float32)        # (bb*tpb, 4C)
    proj = proj + bias                    # single lane-dense (128-lane) VALU add

    # Hoisted once (not per batch / per head): Wo sublane slices + output bias.
    wo_heads = [w[h * head_dim:(h + 1) * head_dim, 3 * c:4 * c]
                for h in range(num_heads)]                             # (dh, C) bf16
    bo_eff = jnp.broadcast_to(bias[:, 3 * c:4 * c], (nq, c))           # (nq, C)

    for bi in range(bb):                  # statically unrolled
        base = bi * tpb
        qb = proj[base:base + nq, 0:c]                        # (nq, C) scaled, +bq
        kb = proj[base + nq:base + nq + nk, c:2 * c]          # (nk, C)
        vb = proj[base + nq + nk:base + tpb, 2 * c:3 * c]     # (nk, C)

        acc = bo_eff                                          # folded bv@Wo + bo
        for h in range(num_heads):        # statically unrolled, plain 2-D dots
            lo, hi = h * head_dim, (h + 1) * head_dim
            qh, kh, vh = qb[:, lo:hi], kb[:, lo:hi], vb[:, lo:hi]
            # scores = qh @ kh.T   (1/sqrt(dh) already folded into Wq/bq)
            s = jax.lax.dot_general(qh, kh, (((1,), (1,)), ((), ())),
                                    preferred_element_type=jnp.float32)   # (nq, nk)
            s = s - jnp.max(s, axis=-1, keepdims=True)
            e = jnp.exp(s)
            p = e * pl.reciprocal(jnp.sum(e, axis=-1, keepdims=True), approx=True)
            hv = jnp.dot(p, vh, preferred_element_type=jnp.float32)       # (nq, dh)
            # Accumulate directly into the output projection (no head concat).
            acc = acc + jnp.dot(hv.astype(w.dtype), wo_heads[h],
                                preferred_element_type=jnp.float32)       # (nq, C)

        out_ref[bi] = acc.astype(out_ref.dtype)


# ------------------------------- wrapper -------------------------------------
def pack_params(params, num_heads):
    """Pack the 8 Linear params into one (C, 4C) bf16 weight slab and one
    (1, 4C) f32 bias slab.  Folds 1/sqrt(head_dim) into Wq/bq, drops bk
    (softmax shift-invariance) and folds bv@Wo into the output bias."""
    wq, bq, wk, bk, wv, bv, wo, bo = params
    c = wq.shape[0]
    # Single-slab packing assumes internal_dim == embedding_dim (downsample_rate=1).
    assert wq.shape == wk.shape == wv.shape == wo.shape == (c, c)
    scale = 1.0 / math.sqrt(c // num_heads)
    del bk                                # q_i·bk is constant over keys -> dead
    bo_eff = bv @ wo + bo                 # softmax rows sum to 1 -> bv commutes with Wo
    w_slab = jnp.concatenate([wq * scale, wk, wv, wo], axis=1).astype(jnp.bfloat16)
    zeros = jnp.zeros_like(bq)
    b_slab = jnp.concatenate([bq * scale, zeros, zeros, bo_eff],
                             axis=1).astype(jnp.float32)
    return w_slab, b_slab


def _fold_batch(b, nq, nk, c):
    """Fold the whole batch into one grid step for small problems (all chips):
    per-step prologue (~0.35us) + the duplicated weight/bias DMA dominate the
    ~1us of compute, so sharding across TensorCores gains nothing.  Only shard
    (grid=(B,), 'parallel') when per-step work is genuinely large."""
    return b * (nq + 2 * nk) * c <= (1 << 18)


def attention_forward(q, k, v, w_slab, b_slab, *, num_heads):
    b, nq, c = q.shape
    nk = k.shape[1]
    assert c % num_heads == 0

    # Wrapper-side token packing: ONE contiguous (B, NQ+2*NK, C) bf16 operand,
    # so the kernel needs no reshape/concat prologue and gets a single DMA.
    tokens = jnp.concatenate([q, k, v], axis=1).astype(w_slab.dtype)
    tpb = nq + 2 * nk

    bb = b if _fold_batch(b, nq, nk, c) else 1
    grid = (b // bb,)

    kernel = partial(attention_kernel, num_heads=num_heads,
                     head_dim=c // num_heads, nq=nq, nk=nk)

    return pl.pallas_call(
        kernel,
        out_shape=jax.ShapeDtypeStruct((b, nq, c), jnp.float32),
        grid_spec=pltpu.PrefetchScalarGridSpec(
            num_scalar_prefetch=0,
            grid=grid,
            in_specs=[
                pl.BlockSpec((bb, tpb, c), lambda i: (i, 0, 0)),
                pl.BlockSpec((c, 4 * c), lambda i: (0, 0)),
                pl.BlockSpec((1, 4 * c), lambda i: (0, 0)),
            ],
            out_specs=pl.BlockSpec((bb, nq, c), lambda i: (i, 0, 0)),
        ),
        compiler_params=pltpu.CompilerParams(
            dimension_semantics=("arbitrary",) if bb == b else ("parallel",)),
    )(tokens, w_slab, b_slab)


# ------------------------------ param init -----------------------------------
def init_params(key):
    keys = iter(jax.random.split(key, 8))

    def lin(in_dim, out_dim):
        s = 1.0 / math.sqrt(in_dim)
        w = jax.random.uniform(next(keys), (in_dim, out_dim),
                               minval=-s, maxval=s, dtype=jnp.float32)
        b = jax.random.uniform(next(keys), (1, out_dim),
                               minval=-s, maxval=s, dtype=jnp.float32)
        return w, b

    wq, bq = lin(C, C)
    wk, bk = lin(C, C)
    wv, bv = lin(C, C)
    wo, bo = lin(C, C)
    return (wq, bq, wk, bk, wv, bv, wo, bo)


# ------------------------------ pure-JAX reference ----------------------------
def _ref_attention(q, k, v, params, num_heads):
    wq, bq, wk, bk, wv, bv, wo, bo = params
    q = q @ wq + bq
    k = k @ wk + bk
    v = v @ wv + bv
    b, nq, c = q.shape
    nk = k.shape[1]
    dh = c // num_heads
    qh = q.reshape(b, nq, num_heads, dh).transpose(0, 2, 1, 3)
    kh = k.reshape(b, nk, num_heads, dh).transpose(0, 2, 1, 3)
    vh = v.reshape(b, nk, num_heads, dh).transpose(0, 2, 1, 3)
    attn = (qh @ kh.transpose(0, 1, 3, 2)) / math.sqrt(dh)
    attn = jax.nn.softmax(attn, axis=-1)
    out = (attn @ vh).transpose(0, 2, 1, 3).reshape(b, nq, c)
    return out @ wo + bo


# ---------------------------------- main --------------------------------------
if __name__ == "__main__":
    key = jax.random.PRNGKey(0)
    kq, kk, kv, kw = jax.random.split(key, 4)

    q = jax.random.normal(kq, (B, NQ, C), dtype=jnp.float32)
    k = jax.random.normal(kk, (B, NK, C), dtype=jnp.float32)
    v = jax.random.normal(kv, (B, NK, C), dtype=jnp.float32)

    params = init_params(kw)
    w_slab, b_slab = pack_params(params, num_heads=H)

    out = jax.block_until_ready(attention_forward(q, k, v, w_slab, b_slab, num_heads=H))
    ref = jax.block_until_ready(_ref_attention(q, k, v, params, num_heads=H))

    assert out.shape == (B, NQ, C)
    # Kernel uses bf16 MXU operands (per perf review) vs. an all-f32 reference,
    # so tolerance is set to bf16-matmul accuracy; real bugs are O(0.1-1).
    assert jnp.allclose(out, ref, atol=2e-2, rtol=2e-2), "mismatch vs reference"

    print("KERNEL_OK")
</pallas_src>

<mosaic_0001>
module attributes {stable_mosaic.version = 11 : i64} {
  func.func @attention_kernel(%arg0: i32, %arg1: memref<2x40x32xbf16, #tpu.memory_space<vmem>>, %arg2: memref<32x128xbf16, #tpu.memory_space<vmem>>, %arg3: memref<1x128xf32, #tpu.memory_space<vmem>>, %arg4: memref<2x8x32xf32, #tpu.memory_space<vmem>>) attributes {dimension_semantics = [#tpu.dimension_semantics<arbitrary>], iteration_bounds = array<i64: 1>, scalar_prefetch = 0 : i64, scratch_operands = 0 : i64, tpu.core_type = #tpu.core_type<tc>, window_params = [{transform_indices = @transform_0, window_bounds = array<i64: 2, 40, 32>}, {pipeline_mode = #tpu.pipeline_mode<synchronous>, transform_indices = @transform_1, window_bounds = array<i64: 32, 128>}, {pipeline_mode = #tpu.pipeline_mode<synchronous>, transform_indices = @transform_2, window_bounds = array<i64: 1, 128>}, {transform_indices = @transform_3, window_bounds = array<i64: 2, 8, 32>}]} {
    %c0 = arith.constant 0 : index
    %c0_0 = arith.constant 0 : index
    %0 = vector.load %arg2[%c0, %c0_0] : memref<32x128xbf16, #tpu.memory_space<vmem>>, vector<32x128xbf16>
    %c0_1 = arith.constant 0 : index
    %c0_2 = arith.constant 0 : index
    %1 = vector.load %arg3[%c0_1, %c0_2] : memref<1x128xf32, #tpu.memory_space<vmem>>, vector<1x128xf32>
    %c0_3 = arith.constant 0 : index
    %c0_4 = arith.constant 0 : index
    %c0_5 = arith.constant 0 : index
    %2 = vector.load %arg1[%c0_3, %c0_4, %c0_5] : memref<2x40x32xbf16, #tpu.memory_space<vmem>>, vector<2x40x32xbf16>
    %3 = vector.shape_cast %2 : vector<2x40x32xbf16> to vector<80x32xbf16>
    %cst = arith.constant dense<0.000000e+00> : vector<80x128xf32>
    %4 = tpu.matmul %3, %0, %cst {dimension_numbers = #tpu.dot_dimension_numbers<[1], [0], [0], [1], [0, 0, 1, 1], [], []>} : vector<80x32xbf16>, vector<32x128xbf16>, vector<80x128xf32> -> vector<80x128xf32>
    %5 = vector.broadcast %1 : vector<1x128xf32> to vector<80x128xf32>
    %6 = arith.addf %4, %5 : vector<80x128xf32>
    %7 = vector.extract_strided_slice %0 {offsets = [0, 96], sizes = [8, 32], strides = [1, 1]} : vector<32x128xbf16> to vector<8x32xbf16>
    %8 = vector.extract_strided_slice %0 {offsets = [8, 96], sizes = [8, 32], strides = [1, 1]} : vector<32x128xbf16> to vector<8x32xbf16>
    %9 = vector.extract_strided_slice %0 {offsets = [16, 96], sizes = [8, 32], strides = [1, 1]} : vector<32x128xbf16> to vector<8x32xbf16>
    %10 = vector.extract_strided_slice %0 {offsets = [24, 96], sizes = [8, 32], strides = [1, 1]} : vector<32x128xbf16> to vector<8x32xbf16>
    %11 = vector.extract_strided_slice %1 {offsets = [0, 96], sizes = [1, 32], strides = [1, 1]} : vector<1x128xf32> to vector<1x32xf32>
    %12 = vector.shape_cast %11 : vector<1x32xf32> to vector<1x32xf32>
    %13 = vector.broadcast %12 : vector<1x32xf32> to vector<8x32xf32>
    %14 = vector.extract_strided_slice %6 {offsets = [0, 0], sizes = [8, 32], strides = [1, 1]} : vector<80x128xf32> to vector<8x32xf32>
    %15 = vector.extract_strided_slice %6 {offsets = [8, 32], sizes = [16, 32], strides = [1, 1]} : vector<80x128xf32> to vector<16x32xf32>
    %16 = vector.extract_strided_slice %6 {offsets = [24, 64], sizes = [16, 32], strides = [1, 1]} : vector<80x128xf32> to vector<16x32xf32>
    %17 = vector.extract_strided_slice %14 {offsets = [0, 0], sizes = [8, 8], strides = [1, 1]} : vector<8x32xf32> to vector<8x8xf32>
    %18 = vector.extract_strided_slice %15 {offsets = [0, 0], sizes = [16, 8], strides = [1, 1]} : vector<16x32xf32> to vector<16x8xf32>
    %19 = vector.extract_strided_slice %16 {offsets = [0, 0], sizes = [16, 8], strides = [1, 1]} : vector<16x32xf32> to vector<16x8xf32>
    %cst_6 = arith.constant dense<0.000000e+00> : vector<8x16xf32>
    %20 = tpu.matmul %17, %18, %cst_6 {dimension_numbers = #tpu.dot_dimension_numbers<[1], [1], [0], [0], [0, 0, 1, 0], [], []>} : vector<8x8xf32>, vector<16x8xf32>, vector<8x16xf32> -> vector<8x16xf32>
    %cst_7 = arith.constant dense<0xFF800000> : vector<8xf32>
    %21 = vector.multi_reduction <maximumf>, %20, %cst_7 [1] : vector<8x16xf32> to vector<8xf32>
    %22 = vector.shape_cast %21 : vector<8xf32> to vector<8x1xf32>
    %23 = vector.broadcast %22 : vector<8x1xf32> to vector<8x16xf32>
    %24 = arith.subf %20, %23 : vector<8x16xf32>
    %25 = math.exp %24 : vector<8x16xf32>
    %cst_8 = arith.constant dense<0.000000e+00> : vector<8xf32>
    %26 = vector.multi_reduction <add>, %25, %cst_8 [1] : vector<8x16xf32> to vector<8xf32>
    %27 = vector.shape_cast %26 : vector<8xf32> to vector<8x1xf32>
    %28 = tpu.reciprocal %27 {approx = true} : vector<8x1xf32> -> vector<8x1xf32>
    %29 = vector.broadcast %28 : vector<8x1xf32> to vector<8x16xf32>
    %30 = arith.mulf %25, %29 : vector<8x16xf32>
    %cst_9 = arith.constant dense<0.000000e+00> : vector<8x8xf32>
    %31 = tpu.matmul %30, %19, %cst_9 {dimension_numbers = #tpu.dot_dimension_numbers<[1], [0], [0], [1], [0, 0, 1, 1], [], []>} : vector<8x16xf32>, vector<16x8xf32>, vector<8x8xf32> -> vector<8x8xf32>
    %32 = arith.truncf %31 : vector<8x8xf32> to vector<8x8xbf16>
    %cst_10 = arith.constant dense<0.000000e+00> : vector<8x32xf32>
    %33 = tpu.matmul %32, %7, %cst_10 {dimension_numbers = #tpu.dot_dimension_numbers<[1], [0], [0], [1], [0, 0, 1, 1], [], []>} : vector<8x8xbf16>, vector<8x32xbf16>, vector<8x32xf32> -> vector<8x32xf32>
    %34 = arith.addf %13, %33 : vector<8x32xf32>
    %35 = vector.extract_strided_slice %14 {offsets = [0, 8], sizes = [8, 8], strides = [1, 1]} : vector<8x32xf32> to vector<8x8xf32>
    %36 = vector.extract_strided_slice %15 {offsets = [0, 8], sizes = [16, 8], strides = [1, 1]} : vector<16x32xf32> to vector<16x8xf32>
    %37 = vector.extract_strided_slice %16 {offsets = [0, 8], sizes = [16, 8], strides = [1, 1]} : vector<16x32xf32> to vector<16x8xf32>
    %cst_11 = arith.constant dense<0.000000e+00> : vector<8x16xf32>
    %38 = tpu.matmul %35, %36, %cst_11 {dimension_numbers = #tpu.dot_dimension_numbers<[1], [1], [0], [0], [0, 0, 1, 0], [], []>} : vector<8x8xf32>, vector<16x8xf32>, vector<8x16xf32> -> vector<8x16xf32>
    %cst_12 = arith.constant dense<0xFF800000> : vector<8xf32>
    %39 = vector.multi_reduction <maximumf>, %38, %cst_12 [1] : vector<8x16xf32> to vector<8xf32>
    %40 = vector.shape_cast %39 : vector<8xf32> to vector<8x1xf32>
    %41 = vector.broadcast %40 : vector<8x1xf32> to vector<8x16xf32>
    %42 = arith.subf %38, %41 : vector<8x16xf32>
    %43 = math.exp %42 : vector<8x16xf32>
    %cst_13 = arith.constant dense<0.000000e+00> : vector<8xf32>
    %44 = vector.multi_reduction <add>, %43, %cst_13 [1] : vector<8x16xf32> to vector<8xf32>
    %45 = vector.shape_cast %44 : vector<8xf32> to vector<8x1xf32>
    %46 = tpu.reciprocal %45 {approx = true} : vector<8x1xf32> -> vector<8x1xf32>
    %47 = vector.broadcast %46 : vector<8x1xf32> to vector<8x16xf32>
    %48 = arith.mulf %43, %47 : vector<8x16xf32>
    %cst_14 = arith.constant dense<0.000000e+00> : vector<8x8xf32>
    %49 = tpu.matmul %48, %37, %cst_14 {dimension_numbers = #tpu.dot_dimension_numbers<[1], [0], [0], [1], [0, 0, 1, 1], [], []>} : vector<8x16xf32>, vector<16x8xf32>, vector<8x8xf32> -> vector<8x8xf32>
    %50 = arith.truncf %49 : vector<8x8xf32> to vector<8x8xbf16>
    %cst_15 = arith.constant dense<0.000000e+00> : vector<8x32xf32>
    %51 = tpu.matmul %50, %8, %cst_15 {dimension_numbers = #tpu.dot_dimension_numbers<[1], [0], [0], [1], [0, 0, 1, 1], [], []>} : vector<8x8xbf16>, vector<8x32xbf16>, vector<8x32xf32> -> vector<8x32xf32>
    %52 = arith.addf %34, %51 : vector<8x32xf32>
    %53 = vector.extract_strided_slice %14 {offsets = [0, 16], sizes = [8, 8], strides = [1, 1]} : vector<8x32xf32> to vector<8x8xf32>
    %54 = vector.extract_strided_slice %15 {offsets = [0, 16], sizes = [16, 8], strides = [1, 1]} : vector<16x32xf32> to vector<16x8xf32>
    %55 = vector.extract_strided_slice %16 {offsets = [0, 16], sizes = [16, 8], strides = [1, 1]} : vector<16x32xf32> to vector<16x8xf32>
    %cst_16 = arith.constant dense<0.000000e+00> : vector<8x16xf32>
    %56 = tpu.matmul %53, %54, %cst_16 {dimension_numbers = #tpu.dot_dimension_numbers<[1], [1], [0], [0], [0, 0, 1, 0], [], []>} : vector<8x8xf32>, vector<16x8xf32>, vector<8x16xf32> -> vector<8x16xf32>
    %cst_17 = arith.constant dense<0xFF800000> : vector<8xf32>
    %57 = vector.multi_reduction <maximumf>, %56, %cst_17 [1] : vector<8x16xf32> to vector<8xf32>
    %58 = vector.shape_cast %57 : vector<8xf32> to vector<8x1xf32>
    %59 = vector.broadcast %58 : vector<8x1xf32> to vector<8x16xf32>
    %60 = arith.subf %56, %59 : vector<8x16xf32>
    %61 = math.exp %60 : vector<8x16xf32>
    %cst_18 = arith.constant dense<0.000000e+00> : vector<8xf32>
    %62 = vector.multi_reduction <add>, %61, %cst_18 [1] : vector<8x16xf32> to vector<8xf32>
    %63 = vector.shape_cast %62 : vector<8xf32> to vector<8x1xf32>
    %64 = tpu.reciprocal %63 {approx = true} : vector<8x1xf32> -> vector<8x1xf32>
    %65 = vector.broadcast %64 : vector<8x1xf32> to vector<8x16xf32>
    %66 = arith.mulf %61, %65 : vector<8x16xf32>
    %cst_19 = arith.constant dense<0.000000e+00> : vector<8x8xf32>
    %67 = tpu.matmul %66, %55, %cst_19 {dimension_numbers = #tpu.dot_dimension_numbers<[1], [0], [0], [1], [0, 0, 1, 1], [], []>} : vector<8x16xf32>, vector<16x8xf32>, vector<8x8xf32> -> vector<8x8xf32>
    %68 = arith.truncf %67 : vector<8x8xf32> to vector<8x8xbf16>
    %cst_20 = arith.constant dense<0.000000e+00> : vector<8x32xf32>
    %69 = tpu.matmul %68, %9, %cst_20 {dimension_numbers = #tpu.dot_dimension_numbers<[1], [0], [0], [1], [0, 0, 1, 1], [], []>} : vector<8x8xbf16>, vector<8x32xbf16>, vector<8x32xf32> -> vector<8x32xf32>
    %70 = arith.addf %52, %69 : vector<8x32xf32>
    %71 = vector.extract_strided_slice %14 {offsets = [0, 24], sizes = [8, 8], strides = [1, 1]} : vector<8x32xf32> to vector<8x8xf32>
    %72 = vector.extract_strided_slice %15 {offsets = [0, 24], sizes = [16, 8], strides = [1, 1]} : vector<16x32xf32> to vector<16x8xf32>
    %73 = vector.extract_strided_slice %16 {offsets = [0, 24], sizes = [16, 8], strides = [1, 1]} : vector<16x32xf32> to vector<16x8xf32>
    %cst_21 = arith.constant dense<0.000000e+00> : vector<8x16xf32>
    %74 = tpu.matmul %71, %72, %cst_21 {dimension_numbers = #tpu.dot_dimension_numbers<[1], [1], [0], [0], [0, 0, 1, 0], [], []>} : vector<8x8xf32>, vector<16x8xf32>, vector<8x16xf32> -> vector<8x16xf32>
    %cst_22 = arith.constant dense<0xFF800000> : vector<8xf32>
    %75 = vector.multi_reduction <maximumf>, %74, %cst_22 [1] : vector<8x16xf32> to vector<8xf32>
    %76 = vector.shape_cast %75 : vector<8xf32> to vector<8x1xf32>
    %77 = vector.broadcast %76 : vector<8x1xf32> to vector<8x16xf32>
    %78 = arith.subf %74, %77 : vector<8x16xf32>
    %79 = math.exp %78 : vector<8x16xf32>
    %cst_23 = arith.constant dense<0.000000e+00> : vector<8xf32>
    %80 = vector.multi_reduction <add>, %79, %cst_23 [1] : vector<8x16xf32> to vector<8xf32>
    %81 = vector.shape_cast %80 : vector<8xf32> to vector<8x1xf32>
    %82 = tpu.reciprocal %81 {approx = true} : vector<8x1xf32> -> vector<8x1xf32>
    %83 = vector.broadcast %82 : vector<8x1xf32> to vector<8x16xf32>
    %84 = arith.mulf %79, %83 : vector<8x16xf32>
    %cst_24 = arith.constant dense<0.000000e+00> : vector<8x8xf32>
    %85 = tpu.matmul %84, %73, %cst_24 {dimension_numbers = #tpu.dot_dimension_numbers<[1], [0], [0], [1], [0, 0, 1, 1], [], []>} : vector<8x16xf32>, vector<16x8xf32>, vector<8x8xf32> -> vector<8x8xf32>
    %86 = arith.truncf %85 : vector<8x8xf32> to vector<8x8xbf16>
    %cst_25 = arith.constant dense<0.000000e+00> : vector<8x32xf32>
    %87 = tpu.matmul %86, %10, %cst_25 {dimension_numbers = #tpu.dot_dimension_numbers<[1], [0], [0], [1], [0, 0, 1, 1], [], []>} : vector<8x8xbf16>, vector<8x32xbf16>, vector<8x32xf32> -> vector<8x32xf32>
    %88 = arith.addf %70, %87 : vector<8x32xf32>
    %c0_26 = arith.constant 0 : index
    %c0_27 = arith.constant 0 : index
    %c0_28 = arith.constant 0 : index
    %89 = vector.load %arg4[%c0_26, %c0_27, %c0_28] : memref<2x8x32xf32, #tpu.memory_space<vmem>>, vector<1x8x32xf32>
    %90 = vector.shape_cast %89 : vector<1x8x32xf32> to vector<8x32xf32>
    %91 = vector.shape_cast %88 : vector<8x32xf32> to vector<1x8x32xf32>
    tpu.vector_store %arg4[%c0_26, %c0_27, %c0_28], %91 {strides = array<i32>} : memref<2x8x32xf32, #tpu.memory_space<vmem>>, vector<1x8x32xf32>,
    %92 = vector.extract_strided_slice %6 {offsets = [40, 0], sizes = [8, 32], strides = [1, 1]} : vector<80x128xf32> to vector<8x32xf32>
    %93 = vector.extract_strided_slice %6 {offsets = [48, 32], sizes = [16, 32], strides = [1, 1]} : vector<80x128xf32> to vector<16x32xf32>
    %94 = vector.extract_strided_slice %6 {offsets = [64, 64], sizes = [16, 32], strides = [1, 1]} : vector<80x128xf32> to vector<16x32xf32>
    %95 = vector.extract_strided_slice %92 {offsets = [0, 0], sizes = [8, 8], strides = [1, 1]} : vector<8x32xf32> to vector<8x8xf32>
    %96 = vector.extract_strided_slice %93 {offsets = [0, 0], sizes = [16, 8], strides = [1, 1]} : vector<16x32xf32> to vector<16x8xf32>
    %97 = vector.extract_strided_slice %94 {offsets = [0, 0], sizes = [16, 8], strides = [1, 1]} : vector<16x32xf32> to vector<16x8xf32>
    %cst_29 = arith.constant dense<0.000000e+00> : vector<8x16xf32>
    %98 = tpu.matmul %95, %96, %cst_29 {dimension_numbers = #tpu.dot_dimension_numbers<[1], [1], [0], [0], [0, 0, 1, 0], [], []>} : vector<8x8xf32>, vector<16x8xf32>, vector<8x16xf32> -> vector<8x16xf32>
    %cst_30 = arith.constant dense<0xFF800000> : vector<8xf32>
    %99 = vector.multi_reduction <maximumf>, %98, %cst_30 [1] : vector<8x16xf32> to vector<8xf32>
    %100 = vector.shape_cast %99 : vector<8xf32> to vector<8x1xf32>
    %101 = vector.broadcast %100 : vector<8x1xf32> to vector<8x16xf32>
    %102 = arith.subf %98, %101 : vector<8x16xf32>
    %103 = math.exp %102 : vector<8x16xf32>
    %cst_31 = arith.constant dense<0.000000e+00> : vector<8xf32>
    %104 = vector.multi_reduction <add>, %103, %cst_31 [1] : vector<8x16xf32> to vector<8xf32>
    %105 = vector.shape_cast %104 : vector<8xf32> to vector<8x1xf32>
    %106 = tpu.reciprocal %105 {approx = true} : vector<8x1xf32> -> vector<8x1xf32>
    %107 = vector.broadcast %106 : vector<8x1xf32> to vector<8x16xf32>
    %108 = arith.mulf %103, %107 : vector<8x16xf32>
    %cst_32 = arith.constant dense<0.000000e+00> : vector<8x8xf32>
    %109 = tpu.matmul %108, %97, %cst_32 {dimension_numbers = #tpu.dot_dimension_numbers<[1], [0], [0], [1], [0, 0, 1, 1], [], []>} : vector<8x16xf32>, vector<16x8xf32>, vector<8x8xf32> -> vector<8x8xf32>
    %110 = arith.truncf %109 : vector<8x8xf32> to vector<8x8xbf16>
    %cst_33 = arith.constant dense<0.000000e+00> : vector<8x32xf32>
    %111 = tpu.matmul %110, %7, %cst_33 {dimension_numbers = #tpu.dot_dimension_numbers<[1], [0], [0], [1], [0, 0, 1, 1], [], []>} : vector<8x8xbf16>, vector<8x32xbf16>, vector<8x32xf32> -> vector<8x32xf32>
    %112 = arith.addf %13, %111 : vector<8x32xf32>
    %113 = vector.extract_strided_slice %92 {offsets = [0, 8], sizes = [8, 8], strides = [1, 1]} : vector<8x32xf32> to vector<8x8xf32>
    %114 = vector.extract_strided_slice %93 {offsets = [0, 8], sizes = [16, 8], strides = [1, 1]} : vector<16x32xf32> to vector<16x8xf32>
    %115 = vector.extract_strided_slice %94 {offsets = [0, 8], sizes = [16, 8], strides = [1, 1]} : vector<16x32xf32> to vector<16x8xf32>
    %cst_34 = arith.constant dense<0.000000e+00> : vector<8x16xf32>
    %116 = tpu.matmul %113, %114, %cst_34 {dimension_numbers = #tpu.dot_dimension_numbers<[1], [1], [0], [0], [0, 0, 1, 0], [], []>} : vector<8x8xf32>, vector<16x8xf32>, vector<8x16xf32> -> vector<8x16xf32>
    %cst_35 = arith.constant dense<0xFF800000> : vector<8xf32>
    %117 = vector.multi_reduction <maximumf>, %116, %cst_35 [1] : vector<8x16xf32> to vector<8xf32>
    %118 = vector.shape_cast %117 : vector<8xf32> to vector<8x1xf32>
    %119 = vector.broadcast %118 : vector<8x1xf32> to vector<8x16xf32>
    %120 = arith.subf %116, %119 : vector<8x16xf32>
    %121 = math.exp %120 : vector<8x16xf32>
    %cst_36 = arith.constant dense<0.000000e+00> : vector<8xf32>
    %122 = vector.multi_reduction <add>, %121, %cst_36 [1] : vector<8x16xf32> to vector<8xf32>
    %123 = vector.shape_cast %122 : vector<8xf32> to vector<8x1xf32>
    %124 = tpu.reciprocal %123 {approx = true} : vector<8x1xf32> -> vector<8x1xf32>
    %125 = vector.broadcast %124 : vector<8x1xf32> to vector<8x16xf32>
    %126 = arith.mulf %121, %125 : vector<8x16xf32>
    %cst_37 = arith.constant dense<0.000000e+00> : vector<8x8xf32>
    %127 = tpu.matmul %126, %115, %cst_37 {dimension_numbers = #tpu.dot_dimension_numbers<[1], [0], [0], [1], [0, 0, 1, 1], [], []>} : vector<8x16xf32>, vector<16x8xf32>, vector<8x8xf32> -> vector<8x8xf32>
    %128 = arith.truncf %127 : vector<8x8xf32> to vector<8x8xbf16>
    %cst_38 = arith.constant dense<0.000000e+00> : vector<8x32xf32>
    %129 = tpu.matmul %128, %8, %cst_38 {dimension_numbers = #tpu.dot_dimension_numbers<[1], [0], [0], [1], [0, 0, 1, 1], [], []>} : vector<8x8xbf16>, vector<8x32xbf16>, vector<8x32xf32> -> vector<8x32xf32>
    %130 = arith.addf %112, %129 : vector<8x32xf32>
    %131 = vector.extract_strided_slice %92 {offsets = [0, 16], sizes = [8, 8], strides = [1, 1]} : vector<8x32xf32> to vector<8x8xf32>
    %132 = vector.extract_strided_slice %93 {offsets = [0, 16], sizes = [16, 8], strides = [1, 1]} : vector<16x32xf32> to vector<16x8xf32>
    %133 = vector.extract_strided_slice %94 {offsets = [0, 16], sizes = [16, 8], strides = [1, 1]} : vector<16x32xf32> to vector<16x8xf32>
    %cst_39 = arith.constant dense<0.000000e+00> : vector<8x16xf32>
    %134 = tpu.matmul %131, %132, %cst_39 {dimension_numbers = #tpu.dot_dimension_numbers<[1], [1], [0], [0], [0, 0, 1, 0], [], []>} : vector<8x8xf32>, vector<16x8xf32>, vector<8x16xf32> -> vector<8x16xf32>
    %cst_40 = arith.constant dense<0xFF800000> : vector<8xf32>
    %135 = vector.multi_reduction <maximumf>, %134, %cst_40 [1] : vector<8x16xf32> to vector<8xf32>
    %136 = vector.shape_cast %135 : vector<8xf32> to vector<8x1xf32>
    %137 = vector.broadcast %136 : vector<8x1xf32> to vector<8x16xf32>
    %138 = arith.subf %134, %137 : vector<8x16xf32>
    %139 = math.exp %138 : vector<8x16xf32>
    %cst_41 = arith.constant dense<0.000000e+00> : vector<8xf32>
    %140 = vector.multi_reduction <add>, %139, %cst_41 [1] : vector<8x16xf32> to vector<8xf32>
    %141 = vector.shape_cast %140 : vector<8xf32> to vector<8x1xf32>
    %142 = tpu.reciprocal %141 {approx = true} : vector<8x1xf32> -> vector<8x1xf32>
    %143 = vector.broadcast %142 : vector<8x1xf32> to vector<8x16xf32>
    %144 = arith.mulf %139, %143 : vector<8x16xf32>
    %cst_42 = arith.constant dense<0.000000e+00> : vector<8x8xf32>
    %145 = tpu.matmul %144, %133, %cst_42 {dimension_numbers = #tpu.dot_dimension_numbers<[1], [0], [0], [1], [0, 0, 1, 1], [], []>} : vector<8x16xf32>, vector<16x8xf32>, vector<8x8xf32> -> vector<8x8xf32>
    %146 = arith.truncf %145 : vector<8x8xf32> to vector<8x8xbf16>
    %cst_43 = arith.constant dense<0.000000e+00> : vector<8x32xf32>
    %147 = tpu.matmul %146, %9, %cst_43 {dimension_numbers = #tpu.dot_dimension_numbers<[1], [0], [0], [1], [0, 0, 1, 1], [], []>} : vector<8x8xbf16>, vector<8x32xbf16>, vector<8x32xf32> -> vector<8x32xf32>
    %148 = arith.addf %130, %147 : vector<8x32xf32>
    %149 = vector.extract_strided_slice %92 {offsets = [0, 24], sizes = [8, 8], strides = [1, 1]} : vector<8x32xf32> to vector<8x8xf32>
    %150 = vector.extract_strided_slice %93 {offsets = [0, 24], sizes = [16, 8], strides = [1, 1]} : vector<16x32xf32> to vector<16x8xf32>
    %151 = vector.extract_strided_slice %94 {offsets = [0, 24], sizes = [16, 8], strides = [1, 1]} : vector<16x32xf32> to vector<16x8xf32>
    %cst_44 = arith.constant dense<0.000000e+00> : vector<8x16xf32>
    %152 = tpu.matmul %149, %150, %cst_44 {dimension_numbers = #tpu.dot_dimension_numbers<[1], [1], [0], [0], [0, 0, 1, 0], [], []>} : vector<8x8xf32>, vector<16x8xf32>, vector<8x16xf32> -> vector<8x16xf32>
    %cst_45 = arith.constant dense<0xFF800000> : vector<8xf32>
    %153 = vector.multi_reduction <maximumf>, %152, %cst_45 [1] : vector<8x16xf32> to vector<8xf32>
    %154 = vector.shape_cast %153 : vector<8xf32> to vector<8x1xf32>
    %155 = vector.broadcast %154 : vector<8x1xf32> to vector<8x16xf32>
    %156 = arith.subf %152, %155 : vector<8x16xf32>
    %157 = math.exp %156 : vector<8x16xf32>
    %cst_46 = arith.constant dense<0.000000e+00> : vector<8xf32>
    %158 = vector.multi_reduction <add>, %157, %cst_46 [1] : vector<8x16xf32> to vector<8xf32>
    %159 = vector.shape_cast %158 : vector<8xf32> to vector<8x1xf32>
    %160 = tpu.reciprocal %159 {approx = true} : vector<8x1xf32> -> vector<8x1xf32>
    %161 = vector.broadcast %160 : vector<8x1xf32> to vector<8x16xf32>
    %162 = arith.mulf %157, %161 : vector<8x16xf32>
    %cst_47 = arith.constant dense<0.000000e+00> : vector<8x8xf32>
    %163 = tpu.matmul %162, %151, %cst_47 {dimension_numbers = #tpu.dot_dimension_numbers<[1], [0], [0], [1], [0, 0, 1, 1], [], []>} : vector<8x16xf32>, vector<16x8xf32>, vector<8x8xf32> -> vector<8x8xf32>
    %164 = arith.truncf %163 : vector<8x8xf32> to vector<8x8xbf16>
    %cst_48 = arith.constant dense<0.000000e+00> : vector<8x32xf32>
    %165 = tpu.matmul %164, %10, %cst_48 {dimension_numbers = #tpu.dot_dimension_numbers<[1], [0], [0], [1], [0, 0, 1, 1], [], []>} : vector<8x8xbf16>, vector<8x32xbf16>, vector<8x32xf32> -> vector<8x32xf32>
    %166 = arith.addf %148, %165 : vector<8x32xf32>
    %c1 = arith.constant 1 : index
    %c0_49 = arith.constant 0 : index
    %c0_50 = arith.constant 0 : index
    %167 = vector.load %arg4[%c1, %c0_49, %c0_50] : memref<2x8x32xf32, #tpu.memory_space<vmem>>, vector<1x8x32xf32>
    %168 = vector.shape_cast %167 : vector<1x8x32xf32> to vector<8x32xf32>
    %169 = vector.shape_cast %166 : vector<8x32xf32> to vector<1x8x32xf32>
    tpu.vector_store %arg4[%c1, %c0_49, %c0_50], %169 {strides = array<i32>} : memref<2x8x32xf32, #tpu.memory_space<vmem>>, vector<1x8x32xf32>,
    return
  }
  func.func @transform_0(%arg0: i32) -> (i32, i32, i32) {
    %c0_i32 = arith.constant 0 : i32
    %c0_i32_0 = arith.constant 0 : i32
    %c0_i32_1 = arith.constant 0 : i32
    return %arg0, %c0_i32, %c0_i32_0 : i32, i32, i32
  }
  func.func @transform_1(%arg0: i32) -> (i32, i32) {
    %c0_i32 = arith.constant 0 : i32
    %c0_i32_0 = arith.constant 0 : i32
    %c0_i32_1 = arith.constant 0 : i32
    return %c0_i32, %c0_i32_0 : i32, i32
  }
  func.func @transform_2(%arg0: i32) -> (i32, i32) {
    %c0_i32 = arith.constant 0 : i32
    %c0_i32_0 = arith.constant 0 : i32
    %c0_i32_1 = arith.constant 0 : i32
    return %c0_i32, %c0_i32_0 : i32, i32
  }
  func.func @transform_3(%arg0: i32) -> (i32, i32, i32) {
    %c0_i32 = arith.constant 0 : i32
    %c0_i32_0 = arith.constant 0 : i32
    %c0_i32_1 = arith.constant 0 : i32
    return %arg0, %c0_i32, %c0_i32_0 : i32, i32, i32
  }
}

</mosaic_0001>

<bundles_post_ra>
// kernel: tpu_custom_call.1
= control target key start
LH: loop header
LB: loop body
LE: loop exit
PB: predicated region body
PF: predicated region fallthrough
CT: control target
= control target key end

     0   :  { %s1398_s0 = inlined_call_operand.vmem [shape: bf16[2,40,32], index: 0, kind: input, shape index: {}]   ;;  %s1399_s1 = inlined_call_operand.vmem [shape: bf16[32,128], index: 1, kind: input, shape index: {}]   ;;  %s1400_s2 = inlined_call_operand.vmem [shape: f32[1,128], index: 2, kind: input, shape index: {}]   ;;  %s1401_s3 = inlined_call_operand.hbm [shape: f32[2,8,32], index: 3, kind: output, shape index: {}]  }
   0x1   :  { %v1166_v0 = vld [vmem:[%s1399_s1 + $0x8] sm:$0xff]   ;;  %v1172_v1 = vld [vmem:[%s1399_s1] sm:$0xff]  }
   0x2   :  { %93 = vmatpush.bf16.msra.mxu0 %v1166_v0 }
   0x3   :  { %8 = vsyncpa [#allocation3], 0  ;;  %v1000_v2 = vld [vmem:[%s1398_s0] sm:$0xff]  ;;  %vm71_vm0 = vcmask 261120   ;;  %v1001_v3 = vld [vmem:[%s1398_s0 + $0x8] sm:$0xff]  ;;  %s1128_s23 = smov 96   ;;  %v1007_v16 = vunpack.c.l.b16 %v1172_v1  ;;  %v1008_v63 = vunpack.c.h.b16 %v1172_v1 }
   0x4   :  { %v1002_v4 = vld [vmem:[%s1398_s0 + $0x10] sm:$0xff]  ;;  %v1190_v7 = vld [vmem:[%s1400_s2] ss:$0 sm:$0xff]  ;;  %s1129_s2 = smov 88   ;;  %s1130_s24 = smov 64   ;;  %vm127_vm1 = vcmask 64512  }
   0x5   :  { %v199_v17 = vpack.c.b16 %v1007_v16, %v1007_v16  ;;  %s1131_s25 = smov 80   ;;  %s1132_s26 = smov 32   ;;  %vm205_vm2 = vcmask 1043456   ;;  %vm155_vm3 = vcmask 130048  }
   0x6   :  { %94 = vmatpush.bf16.msra.mxu0 %v1172_v1  ;;  %s1133_s27 = smov 112   ;;  %s1134_s28 = smov 120  }
   0x7   :  { %s1135_s29 = smov 56   ;;  %s1136_s30 = smov 72  }
   0x8   :  { %s1137_s4 = smov 104   ;;  %s1138_s5 = smov 48  }
   0x9   :  { %955 = vmatmul.msk.bf16.vlgmr.msra.gmra.mxu0 %vm71_vm0, %v1000_v2  ;;  %v300_v2 = vpack.c.b16 %v1008_v63, %v1008_v63  ;;  %s1139_s6 = smov 40   ;;  %s923_s14 = sshll.u32 %s1401_s3, 4  ;;  %s924_s14 = int_to_ptr.hbm [resolvable:$true] %s923_s14 }
   0xa   :  { %s1141_s15 = smov 128   ;;  %s1142_s16 = smov 8  }
  0x19   :  { %956 = vmatmul.msk.bf16.gmra.mxu0 %vm71_vm0, %v1001_v3 }
  0x29   :  { %957 = vmatmul.msk.bf16.gmra.mxu0 %vm71_vm0, %v1002_v4 }
  0x86   :  { %v96_v5 = vpop.f32.mrf.mxu0 }
  0x87   :  { %v1215_v18 = vadd.f32 %v1190_v7, %v96_v5 }
  0x8e   :  { %v98_v6 = vpop.f32.mrf.mxu0 }
  0x8f   :  { %v1198_v11 = vadd.f32 %v1190_v7, %v98_v6 }
  0x96   :  { %v101_v8 = vpop.f32.mrf.mxu0 }
  0x97   :  { %v1193_v9 = vadd.f32 %v1190_v7, %v101_v8 }
  0x99   :  { %125 = vrot.lane.b32.xlu0 %v1193_v9, %s1128_s23 }
  0x9e   :  { %v103_v10 = vpop.f32.mrf.mxu0 }
  0x9f   :  { %v104_v13 = vadd.f32 %v1190_v7, %v103_v10 }
  0xa1   :  { %123 = vrot.lane.b32.xlu0 %v1198_v11, %s1128_s23 }
  0xa6   :  { %v106_v12 = vpop.f32.mrf.mxu0 }
  0xa7   :  { %v107_v14 = vadd.f32 %v1190_v7, %v106_v12 }
  0xa9   :  { %231 = vrot.lane.b32.xlu0 %v1193_v9, %s1129_s2  ;;  %v1206_v15 = vpack.i.bf16 %v104_v13, %v107_v14 }
  0xab   :  { %1030 = vrot.lane.b32.xlu2 %v1206_v15, %s1130_s24 }
  0xb1   :  { %331 = vrot.lane.b32.xlu0 %v1193_v9, %s1131_s25 }
  0xb3   :  { %200 = vrot.lane.b32.xlu2 %v199_v17, %s1132_s26 }
  0xb9   :  { %327 = vrot.lane.b32.xlu0 %v1215_v18, %s1133_s27 }
  0xbb   :  { %227 = vrot.lane.b32.xlu2 %v1215_v18, %s1134_s28 }
  0xc3   :  { %329 = vrot.lane.b32.xlu2 %v1198_v11, %s1131_s25 }
 0x105   :  { %v1031_v19 = vpop.permute.xlu2 %1030 }
 0x106   :  { %v1032_v20 = vunpack.i.l.bf16 %v1031_v19  ;;  %v1033_v21 = vunpack.i.h.bf16 %v1031_v19 }
 0x108   :  { %192 = vmatpush.msra.mxu2 %v1032_v20  ;;  %v1003_v20 = vld [vmem:[%s1398_s0 + $0x18] sm:$0xff] }
 0x109   :  { %958 = vmatmul.msk.bf16.gmra.mxu0 %vm71_vm0, %v1003_v20 }
 0x10a   :  { %193 = vmatpush.msra.mxu2 %v1033_v21 }
 0x10b   :  { %v126_v22 = vpop.permute.xlu0 %125 }
 0x10c   :  { %960 = vmatpush.xpose.msk.msra.mxu1 %vm127_vm1, %v126_v22 }
 0x10d   :  { %v201_v23 = vpop.permute.xlu2 %200 }
 0x10e   :  { %v1225_v24 = vsel %vm205_vm2, %v201_v23, 0 }
 0x10f   :  { %216 = vmatpush.bf16.msra.mxu3 %v1225_v24 }
 0x113   :  { %v124_v25 = vpop.permute.xlu0 %123 }
 0x114   :  { %961 = vmatpush.xpose.msk.msra.mxu1 %vm127_vm1, %v124_v25 }
 0x115   :  { %v228_v38 = vpop.permute.xlu2 %227 }
 0x117   :  { %962 = vmatmul.msk.f32.vlgmr.msra.gmra.mxu1 %vm127_vm1, %v1215_v18 }
 0x11b   :  { %v232_v26 = vpop.permute.xlu0 %231 }
 0x11c   :  { %965 = vmatpush.xpose.msk.msrb.mxu3 %vm127_vm1, %v232_v26 }
 0x11d   :  { %v330_v42 = vpop.permute.xlu2 %329 }
 0x123   :  { %v332_v41 = vpop.permute.xlu0 %331 }
 0x12b   :  { %v328_v43 = vpop.permute.xlu0 %327 }
 0x194   :  { %v152_v27 = vpop.f32.mrf.mxu1 }
 0x195   :  { %v156_v28 = vsel %vm155_vm3, %v152_v27, -inf }
 0x196   :  { %157 = vmax.xlane.f32.xlu1 %v156_v28 }
 0x209   :  { %v158_v29 = vpop.xlane.xlu1 %157 }
 0x20a   :  { %v159_v30 = vsub.f32 %v152_v27, %v158_v29  ;;  %v1011_v27 = vunpack.c.l.b16 %v1166_v0  ;;  %v108_v29 = vpop.f32.mrf.mxu0 }
 0x20c   :  { %v160_v31 = vmul.f32 1.442695, %v159_v30  ;;  %v400_v28 = vpack.c.b16 %v1011_v27, %v1011_v27 }
 0x20e   :  { %1070 = vpow2.f32 %v160_v31 }
 0x212   :  { %v111_v30 = vpop.f32.mrf.mxu0 }
 0x214   :  { %v1071_v32 = vpop.eup %1070 }
 0x215   :  { %v162_v33 = vsel %vm155_vm3, %v1071_v32, 0.0 }
 0x216   :  { %163 = vadd.xlane.f32.xlu1 %v162_v33  ;;  %v1288_v33 = vadd.f32 %v1190_v7, %v111_v30 }
 0x21a   :  { %v113_v31 = vpop.f32.mrf.mxu0 }
 0x22f   :  { %229 = vrot.lane.b32.xlu1 %v1198_v11, %s1129_s2 }
 0x289   :  { %v164_v34 = vpop.xlane.xlu1 %163 }
 0x28a   :  { %1072 = vrcp.f32 %v164_v34 }
 0x290   :  { %v1073_v35 = vpop.eup %1072 }
 0x291   :  { %v166_v36 = vmul.f32 %v1073_v35, %v1071_v32  ;;  %v1281_v32 = vadd.f32 %v1190_v7, %v113_v31 }
 0x293   :  { %963 = vmatmul.msk.f32.vlgmr.msra.gmra.mxu2 %vm155_vm3, %v166_v36 }
 0x2a1   :  { %v230_v37 = vpop.permute.xlu1 %229 }
 0x2a2   :  { %966 = vmatpush.xpose.msk.msrb.mxu3 %vm127_vm1, %v230_v37 }
 0x316   :  { %v195_v39 = vpop.f32.mrf.mxu2 }
 0x317   :  { %v198_v40 = vpack.c.bf16 %v195_v39, %v195_v39 }
 0x319   :  { %964 = vmatmul.msk.bf16.vlgmr.msra.gmra.mxu3 %vm127_vm1, %v198_v40 }
 0x31a   :  { %970 = vmatpush.xpose.msk.msra.mxu3 %vm127_vm1, %v332_v41 }
 0x31e   :  { %971 = vmatpush.xpose.msk.msra.mxu3 %vm127_vm1, %v330_v42 }
 0x329   :  { %967 = vmatmul.msk.f32.vlgmr.msrb.gmra.mxu3 %vm127_vm1, %v228_v38 }
 0x331   :  { %972 = vmatmul.msk.f32.vlgmr.msra.gmra.mxu3 %vm127_vm1, %v328_v43 }
 0x39c   :  { %v1243_v44 = vpop.f32.mrf.mxu3 }
 0x3a4   :  { %v220_v45 = vpop.f32.mrf.mxu3 }
 0x3ac   :  { %v256_v46 = vpop.f32.mrf.mxu3 }
 0x3ad   :  { %v259_v47 = vsel %vm155_vm3, %v256_v46, -inf }
 0x3ae   :  { %260 = vmax.xlane.f32.xlu2 %v259_v47  ;;  %v1012_v47 = vunpack.c.h.b16 %v1166_v0 }
 0x3b4   :  { %v356_v48 = vpop.f32.mrf.mxu3 }
 0x3b5   :  { %v359_v49 = vsel %vm155_vm3, %v356_v48, -inf }
 0x3b6   :  { %360 = vmax.xlane.f32.xlu0 %v359_v49 }
 0x3c6   :  { %1035 = vrot.lane.b32.xlu2 %v1206_v15, %s1135_s29 }
 0x3ce   :  { %429 = vrot.lane.b32.xlu2 %v1198_v11, %s1136_s30 }
 0x3d6   :  { %427 = vrot.lane.b32.xlu2 %v1215_v18, %s1137_s4 }
 0x421   :  { %v261_v50 = vpop.xlane.xlu2 %260 }
 0x422   :  { %v262_v51 = vsub.f32 %v256_v46, %v261_v50 }
 0x424   :  { %v263_v52 = vmul.f32 1.442695, %v262_v51 }
 0x426   :  { %1074 = vpow2.f32 %v263_v52  ;;  %v1004_v52 = vld [vmem:[%s1398_s0 + $0x20] sm:$0xff]  ;;  %s1140_s0 = smov [#allocation2]  }
 0x427   :  { %959 = vmatmul.msk.bf16.gmra.mxu0 %vm71_vm0, %v1004_v52  ;;  %s921_s11 = sshll.u32 %s1140_s0, 4  ;;  %s922_s11 = int_to_ptr.vmem [resolvable:$true] %s921_s11 }
 0x429   :  { %v361_v53 = vpop.xlane.xlu0 %360  ;;  %v1036_v54 = vpop.permute.xlu2 %1035 }
 0x42a   :  { %v362_v55 = vsub.f32 %v356_v48, %v361_v53  ;;  %v1037_v56 = vunpack.i.l.bf16 %v1036_v54  ;;  %v1038_v59 = vunpack.i.h.bf16 %v1036_v54  ;;  %v500_v48 = vpack.c.b16 %v1012_v47, %v1012_v47 }
 0x42b   :  { %v1313_v53 = vadd.f32 %v1190_v7, %v108_v29 }
 0x42c   :  { %v1075_v57 = vpop.eup %1074  ;;  %v363_v58 = vmul.f32 1.442695, %v362_v55  ;;  %293 = vmatpush.msrb.mxu1 %v1037_v56 }
 0x42d   :  { %v265_v60 = vsel %vm155_vm3, %v1075_v57, 0.0 }
 0x42e   :  { %1076 = vpow2.f32 %v363_v58  ;;  %266 = vadd.xlane.f32.xlu1 %v265_v60  ;;  %294 = vmatpush.msrb.mxu1 %v1038_v59 }
 0x431   :  { %v430_v11 = vpop.permute.xlu2 %429 }
 0x434   :  { %v1077_v61 = vpop.eup %1076 }
 0x435   :  { %v365_v62 = vsel %vm155_vm3, %v1077_v61, 0.0 }
 0x436   :  { %366 = vadd.xlane.f32.xlu0 %v365_v62 }
 0x439   :  { %v428_v16 = vpop.permute.xlu2 %427 }
 0x447   :  { %1040 = vrot.lane.b32.xlu1 %v1206_v15, %s1138_s5 }
 0x44a   :  { %431 = vrot.lane.b32.xlu0 %v1193_v9, %s1136_s30 }
 0x452   :  { %301 = vrot.lane.b32.xlu0 %v300_v2, %s1132_s26 }
 0x45a   :  { %1045 = vrot.lane.b32.xlu0 %v1206_v15, %s1139_s6 }
 0x462   :  { %536 = vrot.lane.b32.xlu0 %v1281_v32, %s1128_s23 }
 0x46a   :  { %534 = vrot.lane.b32.xlu0 %v1288_v33, %s1128_s23 }
 0x4a1   :  { %v267_v3 = vpop.xlane.xlu1 %266 }
 0x4a2   :  { %1078 = vrcp.f32 %v267_v3 }
 0x4a4   :  { %v116_v62 = vpop.f32.mrf.mxu0 }
 0x4a5   :  { %v117_v2 = vadd.f32 %v1190_v7, %v116_v62 }
 0x4a8   :  { %v1079_v4 = vpop.eup %1078 }
 0x4a9   :  { %v269_v5 = vmul.f32 %v1079_v4, %v1075_v57  ;;  %v367_v6 = vpop.xlane.xlu0 %366 }
 0x4aa   :  { %1080 = vrcp.f32 %v367_v6 }
 0x4ab   :  { %968 = vmatmul.msk.f32.vlgmr.msrb.gmra.mxu1 %vm155_vm3, %v269_v5 }
 0x4ac   :  { %v118_v63 = vpop.f32.mrf.mxu0 }
 0x4ad   :  { %v119_v3 = vadd.f32 %v1190_v7, %v118_v63 }
 0x4af   :  { %v1329_v4 = vpack.i.bf16 %v117_v2, %v119_v3 }
 0x4b0   :  { %v1081_v1 = vpop.eup %1080 }
 0x4b1   :  { %v369_v13 = vmul.f32 %v1081_v1, %v1077_v61 }
 0x4b9   :  { %v1041_v8 = vpop.permute.xlu1 %1040 }
 0x4ba   :  { %v1042_v10 = vunpack.i.l.bf16 %v1041_v8  ;;  %v1043_v9 = vunpack.i.h.bf16 %v1041_v8 }
 0x4bc   :  { %v432_v12 = vpop.permute.xlu0 %431  ;;  %393 = vmatpush.msra.mxu1 %v1042_v10 }
 0x4be   :  { %394 = vmatpush.msra.mxu1 %v1043_v9 }
 0x4bf   :  { %973 = vmatmul.msk.f32.vlgmr.msra.gmra.mxu1 %vm155_vm3, %v369_v13 }
 0x4c0   :  { %975 = vmatpush.xpose.msk.msrb.mxu1 %vm127_vm1, %v432_v12 }
 0x4c4   :  { %976 = vmatpush.xpose.msk.msrb.mxu1 %vm127_vm1, %v430_v11  ;;  %v302_v14 = vpop.permute.xlu0 %301 }
 0x4c5   :  { %v1268_v15 = vsel %vm205_vm2, %v302_v14, 0 }
 0x4c6   :  { %316 = vmatpush.bf16.msrb.mxu2 %v1268_v15 }
 0x4c7   :  { %977 = vmatmul.msk.f32.vlgmr.msrb.gmra.mxu1 %vm127_vm1, %v428_v16 }
 0x4cc   :  { %v1046_v17 = vpop.permute.xlu0 %1045 }
 0x4cd   :  { %v1047_v18 = vunpack.i.l.bf16 %v1046_v17  ;;  %v1048_v19 = vunpack.i.h.bf16 %v1046_v17 }
 0x4cf   :  { %493 = vmatpush.msra.mxu2 %v1047_v18 }
 0x4d1   :  { %494 = vmatpush.msra.mxu2 %v1048_v19 }
 0x4d4   :  { %v537_v45 = vpop.permute.xlu0 %536 }
 0x4dc   :  { %v535_v46 = vpop.permute.xlu0 %534 }
 0x528   :  { %v296_v21 = vpop.f32.mrf.mxu1 }
 0x529   :  { %v299_v22 = vpack.c.bf16 %v296_v21, %v296_v21 }
 0x52b   :  { %969 = vmatmul.msk.bf16.vlgmr.msrb.gmra.mxu2 %vm127_vm1, %v299_v22 }
 0x52c   :  { %980 = vmatpush.xpose.msk.msrb.mxu2 %vm127_vm1, %v537_v45 }
 0x530   :  { %981 = vmatpush.xpose.msk.msrb.mxu2 %vm127_vm1, %v535_v46 }
 0x53c   :  { %v396_v23 = vpop.f32.mrf.mxu1 }
 0x53d   :  { %v399_v43 = vpack.c.bf16 %v396_v23, %v396_v23 }
 0x544   :  { %v456_v25 = vpop.f32.mrf.mxu1 }
 0x545   :  { %v459_v26 = vsel %vm155_vm3, %v456_v25, -inf }
 0x546   :  { %460 = vmax.xlane.f32.xlu1 %v459_v26 }
 0x55f   :  { %401 = vrot.lane.b32.xlu1 %v400_v28, %s1132_s26 }
 0x567   :  { %633 = vrot.lane.b32.xlu1 %v1281_v32, %s1129_s2 }
 0x56f   :  { %631 = vrot.lane.b32.xlu1 %v1288_v33, %s1129_s2 }
 0x577   :  { %501 = vrot.lane.b32.xlu1 %v500_v48, %s1132_s26 }
 0x5ae   :  { %v1294_v34 = vpop.f32.mrf.mxu2 }
 0x5b6   :  { %v320_v35 = vpop.f32.mrf.mxu2 }
 0x5b9   :  { %v461_v36 = vpop.xlane.xlu1 %460 }
 0x5ba   :  { %v462_v37 = vsub.f32 %v456_v25, %v461_v36 }
 0x5bc   :  { %v463_v38 = vmul.f32 1.442695, %v462_v37 }
 0x5be   :  { %1082 = vpow2.f32 %v463_v38 }
 0x5c4   :  { %v1083_v39 = vpop.eup %1082 }
 0x5c5   :  { %v465_v40 = vsel %vm155_vm3, %v1083_v39, 0.0 }
 0x5c6   :  { %466 = vadd.xlane.f32.xlu2 %v465_v40 }
 0x5d1   :  { %v402_v41 = vpop.permute.xlu1 %401 }
 0x5d2   :  { %v1298_v42 = vsel %vm205_vm2, %v402_v41, 0 }
 0x5d3   :  { %416 = vmatpush.bf16.msrb.mxu3 %v1298_v42 }
 0x5d6   :  { %974 = vmatmul.msk.bf16.vlgmr.msrb.gmra.mxu3 %vm127_vm1, %v399_v43 }
 0x5d9   :  { %v634_v55 = vpop.permute.xlu1 %633 }
 0x5e1   :  { %v632_v56 = vpop.permute.xlu1 %631 }
 0x5e9   :  { %v502_v57 = vpop.permute.xlu1 %501 }
 0x5ea   :  { %v1320_v58 = vsel %vm205_vm2, %v502_v57, 0 }
 0x5eb   :  { %516 = vmatpush.bf16.msra.mxu1 %v1320_v58 }
 0x639   :  { %v467_v49 = vpop.xlane.xlu2 %466 }
 0x63a   :  { %1084 = vrcp.f32 %v467_v49 }
 0x640   :  { %v1085_v50 = vpop.eup %1084 }
 0x641   :  { %v469_v51 = vmul.f32 %v1085_v50, %v1083_v39 }
 0x643   :  { %978 = vmatmul.msk.f32.vlgmr.msra.gmra.mxu2 %vm155_vm3, %v469_v51 }
 0x644   :  { %618 = vmatpush.bf16.msra.mxu2 %v1225_v24 }
 0x64b   :  { %982 = vmatmul.msk.f32.vlgmr.msrb.gmra.mxu2 %vm127_vm1, %v1313_v53 }
 0x659   :  { %v1317_v0 = vpop.f32.mrf.mxu3 }
 0x661   :  { %v420_v54 = vpop.f32.mrf.mxu3 }
 0x6c6   :  { %v496_v59 = vpop.f32.mrf.mxu2 }
 0x6c7   :  { %v499_v60 = vpack.c.bf16 %v496_v59, %v496_v59 }
 0x6c9   :  { %979 = vmatmul.msk.bf16.vlgmr.msra.gmra.mxu1 %vm127_vm1, %v499_v60 }
 0x6ce   :  { %v562_v24 = vpop.f32.mrf.mxu2 }
 0x6cf   :  { %v565_v61 = vsel %vm155_vm3, %v562_v24, -inf }
 0x6d0   :  { %566 = vmax.xlane.f32.xlu0 %v565_v61 }
 0x6e4   :  { %629 = vrot.lane.b32.xlu0 %v1313_v53, %s1134_s28 }
 0x6ec   :  { %1055 = vrot.lane.b32.xlu0 %v1329_v4, %s1135_s29 }
 0x6f4   :  { %727 = vrot.lane.b32.xlu0 %v1281_v32, %s1131_s25 }
 0x6fc   :  { %725 = vrot.lane.b32.xlu0 %v1288_v33, %s1131_s25 }
 0x743   :  { %v567_v5 = vpop.xlane.xlu0 %566 }
 0x744   :  { %v568_v6 = vsub.f32 %v562_v24, %v567_v5 }
 0x746   :  { %v569_v8 = vmul.f32 1.442695, %v568_v6  ;;  %v518_v1 = vpop.f32.mrf.mxu1 }
 0x748   :  { %1086 = vpow2.f32 %v569_v8 }
 0x74e   :  { %v1087_v10 = vpop.eup %1086  ;;  %v520_v11 = vpop.f32.mrf.mxu1 }
 0x74f   :  { %v571_v9 = vsel %vm155_vm3, %v1087_v10, 0.0 }
 0x750   :  { %572 = vadd.xlane.f32.xlu2 %v571_v9 }
 0x756   :  { %v630_v12 = vpop.permute.xlu0 %629 }
 0x75e   :  { %v1056_v13 = vpop.permute.xlu0 %1055 }
 0x75f   :  { %v1058_v14 = vunpack.i.h.bf16 %v1056_v13  ;;  %v1057_v16 = vunpack.i.l.bf16 %v1056_v13 }
 0x761   :  { %695 = vmatpush.msrb.mxu1 %v1057_v16 }
 0x763   :  { %696 = vmatpush.msrb.mxu1 %v1058_v14 }
 0x766   :  { %v728_v17 = vpop.permute.xlu0 %727 }
 0x767   :  { %990 = vmatpush.xpose.msk.msra.mxu1 %vm127_vm1, %v728_v17 }
 0x768   :  { %1050 = vrot.lane.b32.xlu2 %v1329_v4, %s1130_s24 }
 0x76e   :  { %v726_v18 = vpop.permute.xlu0 %725 }
 0x76f   :  { %991 = vmatpush.xpose.msk.msra.mxu1 %vm127_vm1, %v726_v18 }
 0x7c3   :  { %v573_v19 = vpop.xlane.xlu2 %572 }
 0x7c4   :  { %1088 = vrcp.f32 %v573_v19 }
 0x7ca   :  { %v1089_v21 = vpop.eup %1088 }
 0x7cb   :  { %v1051_v20 = vpop.permute.xlu2 %1050  ;;  %v575_v25 = vmul.f32 %v1089_v21, %v1087_v10 }
 0x7cc   :  { %v1052_v22 = vunpack.i.l.bf16 %v1051_v20  ;;  %v1053_v23 = vunpack.i.h.bf16 %v1051_v20 }
 0x7ce   :  { %601 = vmatpush.msra.mxu3 %v1052_v22 }
 0x7d0   :  { %602 = vmatpush.msra.mxu3 %v1053_v23 }
 0x7d1   :  { %983 = vmatmul.msk.f32.vlgmr.msra.gmra.mxu3 %vm155_vm3, %v575_v25 }
 0x7d2   :  { %985 = vmatpush.xpose.msk.msrb.mxu3 %vm127_vm1, %v634_v55 }
 0x7d6   :  { %986 = vmatpush.xpose.msk.msrb.mxu3 %vm127_vm1, %v632_v56 }
 0x7d9   :  { %987 = vmatmul.msk.f32.vlgmr.msrb.gmra.mxu3 %vm127_vm1, %v630_v12 }
 0x7da   :  { %712 = vmatpush.bf16.msra.mxu3 %v1268_v15 }
 0x854   :  { %v604_v26 = vpop.f32.mrf.mxu3 }
 0x855   :  { %v607_v27 = vpack.c.bf16 %v604_v26, %v604_v26 }
 0x857   :  { %984 = vmatmul.msk.bf16.vlgmr.msra.gmra.mxu2 %vm127_vm1, %v607_v27 }
 0x85c   :  { %v658_v28 = vpop.f32.mrf.mxu3 }
 0x85d   :  { %v661_v29 = vsel %vm155_vm3, %v658_v28, -inf }
 0x85e   :  { %662 = vmax.xlane.f32.xlu2 %v661_v29 }
 0x876   :  { %723 = vrot.lane.b32.xlu2 %v1313_v53, %s1133_s27 }
 0x87e   :  { %821 = vrot.lane.b32.xlu2 %v1281_v32, %s1136_s30 }
 0x886   :  { %819 = vrot.lane.b32.xlu2 %v1288_v33, %s1136_s30 }
 0x88e   :  { %817 = vrot.lane.b32.xlu2 %v1313_v53, %s1137_s4 }
 0x896   :  { %1065 = vrot.lane.b32.xlu2 %v1329_v4, %s1139_s6 }
 0x8d1   :  { %v663_v15 = vpop.xlane.xlu2 %662 }
 0x8d2   :  { %v664_v30 = vsub.f32 %v658_v28, %v663_v15 }
 0x8d4   :  { %v665_v31 = vmul.f32 1.442695, %v664_v30 }
 0x8d6   :  { %1090 = vpow2.f32 %v665_v31 }
 0x8d9   :  { %v724_v35 = vpop.permute.xlu2 %723 }
 0x8da   :  { %v620_v36 = vpop.f32.mrf.mxu2 }
 0x8db   :  { %625 = vrot.lane.b32.xlu2 %v620_v36, %s1128_s23 }
 0x8dc   :  { %v1091_v37 = vpop.eup %1090 }
 0x8dd   :  { %v667_v32 = vsel %vm155_vm3, %v1091_v37, 0.0 }
 0x8de   :  { %668 = vadd.xlane.f32.xlu1 %v667_v32 }
 0x8e1   :  { %v822_v38 = vpop.permute.xlu2 %821 }
 0x8e2   :  { %v622_v33 = vpop.f32.mrf.mxu2 }
 0x8e3   :  { %323 = vrot.lane.b32.xlu2 %v1294_v34, %s1128_s23 }
 0x8e9   :  { %v820_v39 = vpop.permute.xlu2 %819 }
 0x8eb   :  { %423 = vrot.lane.b32.xlu2 %v1317_v0, %s1128_s23 }
 0x8f1   :  { %v818_v40 = vpop.permute.xlu2 %817 }
 0x8f3   :  { %523 = vrot.lane.b32.xlu2 %v518_v1, %s1128_s23 }
 0x8f9   :  { %v1066_v41 = vpop.permute.xlu2 %1065 }
 0x8fa   :  { %v1067_v43 = vunpack.i.l.bf16 %v1066_v41  ;;  %v1068_v45 = vunpack.i.h.bf16 %v1066_v41 }
 0x8fc   :  { %883 = vmatpush.msrb.mxu3 %v1067_v43 }
 0x8fe   :  { %884 = vmatpush.msrb.mxu3 %v1068_v45 }
 0x935   :  { %v626_v5 = vpop.permute.xlu2 %625 }
 0x936   :  { %v628_v30 = vadd.f32 %v1190_v7, %v626_v5 }
 0x93d   :  { %v324_v10 = vpop.permute.xlu2 %323 }
 0x945   :  { %v424_v13 = vpop.permute.xlu2 %423 }
 0x94d   :  { %v524_v18 = vpop.permute.xlu2 %523 }
 0x951   :  { %v669_v46 = vpop.xlane.xlu1 %668 }
 0x952   :  { %1092 = vrcp.f32 %v669_v46 }
 0x958   :  { %v1093_v47 = vpop.eup %1092 }
 0x959   :  { %v671_v48 = vmul.f32 %v1093_v47, %v1091_v37 }
 0x95b   :  { %988 = vmatmul.msk.f32.vlgmr.msrb.gmra.mxu1 %vm155_vm3, %v671_v48 }
 0x95c   :  { %806 = vmatpush.bf16.msrb.mxu1 %v1298_v42 }
 0x963   :  { %992 = vmatmul.msk.f32.vlgmr.msra.gmra.mxu1 %vm127_vm1, %v724_v35 }
 0x9d8   :  { %v698_v34 = vpop.f32.mrf.mxu1 }
 0x9d9   :  { %v701_v49 = vpack.c.bf16 %v698_v34, %v698_v34 }
 0x9db   :  { %989 = vmatmul.msk.bf16.vlgmr.msra.gmra.mxu3 %vm127_vm1, %v701_v49 }
 0x9e0   :  { %v752_v50 = vpop.f32.mrf.mxu1 }
 0x9e1   :  { %v755_v51 = vsel %vm155_vm3, %v752_v50, -inf }
 0x9e2   :  { %756 = vmax.xlane.f32.xlu0 %v755_v51 }
 0xa55   :  { %v757_v52 = vpop.xlane.xlu0 %756 }
 0xa56   :  { %v758_v53 = vsub.f32 %v752_v50, %v757_v52 }
 0xa58   :  { %v759_v0 = vmul.f32 1.442695, %v758_v53 }
 0xa5a   :  { %1094 = vpow2.f32 %v759_v0 }
 0xa5e   :  { %v714_v54 = vpop.f32.mrf.mxu3 }
 0xa60   :  { %v1095_v55 = vpop.eup %1094 }
 0xa61   :  { %v761_v56 = vsel %vm155_vm3, %v1095_v55, 0.0 }
 0xa62   :  { %762 = vadd.xlane.f32.xlu1 %v761_v56 }
 0xa66   :  { %v716_v42 = vpop.f32.mrf.mxu3 }
 0xa7b   :  { %1060 = vrot.lane.b32.xlu1 %v1329_v4, %s1138_s5 }
 0xad5   :  { %v763_v57 = vpop.xlane.xlu1 %762 }
 0xad6   :  { %1096 = vrcp.f32 %v763_v57 }
 0xadc   :  { %v1097_v60 = vpop.eup %1096 }
 0xadd   :  { %v765_v62 = vmul.f32 %v1097_v60, %v1095_v55 }
 0xaed   :  { %v1061_v59 = vpop.permute.xlu1 %1060 }
 0xaee   :  { %v1062_v24 = vunpack.i.l.bf16 %v1061_v59  ;;  %v1063_v61 = vunpack.i.h.bf16 %v1061_v59 }
 0xaf0   :  { %789 = vmatpush.msrb.mxu2 %v1062_v24 }
 0xaf2   :  { %790 = vmatpush.msrb.mxu2 %v1063_v61 }
 0xaf3   :  { %993 = vmatmul.msk.f32.vlgmr.msrb.gmra.mxu2 %vm155_vm3, %v765_v62 }
 0xaf4   :  { %995 = vmatpush.xpose.msk.msra.mxu2 %vm127_vm1, %v822_v38 }
 0xaf8   :  { %996 = vmatpush.xpose.msk.msra.mxu2 %vm127_vm1, %v820_v39 }
 0xafb   :  { %997 = vmatmul.msk.f32.vlgmr.msra.gmra.mxu2 %vm127_vm1, %v818_v40 }
 0xafc   :  { %900 = vmatpush.bf16.msrb.mxu2 %v1320_v58 }
 0xb76   :  { %v792_v63 = vpop.f32.mrf.mxu2 }
 0xb77   :  { %v795_v2 = vpack.c.bf16 %v792_v63, %v792_v63 }
 0xb79   :  { %994 = vmatmul.msk.bf16.vlgmr.msrb.gmra.mxu1 %vm127_vm1, %v795_v2 }
 0xb7e   :  { %v846_v3 = vpop.f32.mrf.mxu2 }
 0xb7f   :  { %v849_v4 = vsel %vm155_vm3, %v846_v3, -inf }
 0xb80   :  { %850 = vmax.xlane.f32.xlu0 %v849_v4 }
 0xb94   :  { %223 = vrot.lane.b32.xlu0 %v1243_v44, %s1128_s23 }
 0xb9c   :  { %719 = vrot.lane.b32.xlu0 %v714_v54, %s1128_s23 }
 0xbf3   :  { %v851_v6 = vpop.xlane.xlu0 %850 }
 0xbf4   :  { %v852_v8 = vsub.f32 %v846_v3, %v851_v6 }
 0xbf6   :  { %v853_v1 = vmul.f32 1.442695, %v852_v8  ;;  %v808_v58 = vpop.f32.mrf.mxu1 }
 0xbf7   :  { %813 = vrot.lane.b32.xlu0 %v808_v58, %s1128_s23 }
 0xbf8   :  { %1098 = vpow2.f32 %v853_v1 }
 0xbfe   :  { %v1099_v11 = vpop.eup %1098  ;;  %v810_v9 = vpop.f32.mrf.mxu1 }
 0xbff   :  { %v855_v12 = vsel %vm155_vm3, %v1099_v11, 0.0 }
 0xc00   :  { %856 = vadd.xlane.f32.xlu1 %v855_v12 }
 0xc06   :  { %v224_v14 = vpop.permute.xlu0 %223 }
 0xc07   :  { %v226_v44 = vadd.f32 %v1190_v7, %v224_v14 }
 0xc09   :  { %v326_v16 = vadd.f32 %v324_v10, %v226_v44 }
 0xc0b   :  { %v426_v17 = vadd.f32 %v424_v13, %v326_v16 }
 0xc0d   :  { %v526_v19 = vadd.f32 %v524_v18, %v426_v17 }
 0xc0e   :  { %v720_v29 = vpop.permute.xlu0 %719 }
 0xc0f   :  { %528 = vrot.lane.b32.xlu2 %v526_v19, %s1132_s26  ;;  %v722_v31 = vadd.f32 %v720_v29, %v628_v30 }
 0xc69   :  { %v529_v20 = vpop.permute.xlu2 %528  ;;  %v814_v15 = vpop.permute.xlu0 %813 }
 0xc6a   :  { %531 = vst.msk [vmem:[#allocation2] sm:$0xff] %vm71_vm0, %v529_v20  ;;  %v816_v35 = vadd.f32 %v814_v15, %v722_v31 }
 0xc73   :  { %v857_v21 = vpop.xlane.xlu1 %856 }
 0xc74   :  { %1100 = vrcp.f32 %v857_v21 }
 0xc7a   :  { %v1101_v22 = vpop.eup %1100 }
 0xc7b   :  { %v859_v23 = vmul.f32 %v1101_v22, %v1099_v11 }
 0xc7d   :  { %998 = vmatmul.msk.f32.vlgmr.msrb.gmra.mxu3 %vm155_vm3, %v859_v23 }
 0xd00   :  { %v886_v25 = vpop.f32.mrf.mxu3 }
 0xd01   :  { %v889_v26 = vpack.c.bf16 %v886_v25, %v886_v25 }
 0xd03   :  { %999 = vmatmul.msk.bf16.vlgmr.msrb.gmra.mxu2 %vm127_vm1, %v889_v26 }
 0xd86   :  { %v902_v27 = vpop.f32.mrf.mxu2 }
 0xd87   :  { %907 = vrot.lane.b32.xlu0 %v902_v27, %s1128_s23 }
 0xd8e   :  { %v904_v28 = vpop.f32.mrf.mxu2 }
 0xdf9   :  { %v908_v36 = vpop.permute.xlu0 %907 }
 0xdfa   :  { %v910_v37 = vadd.f32 %v908_v36, %v816_v35 }
 0xdfc   :  { %912 = vrot.lane.b32.xlu1 %v910_v37, %s1132_s26 }
 0xe6e   :  { %v913_v32 = vpop.permute.xlu1 %912 }
 0xe6f   :  { %916 = vst.msk [vmem:[#allocation2 + $0x8] sm:$0xff] %vm71_vm0, %v913_v32 }
 0xe70   :  { %929 = dma.vmem_to_hbm [thread:$0]  %s922_s11, 256, %s924_s14, [#allocation3], %s1141_s15, %s1141_s15, %s1142_s16  }
 0xe71   :  { %1126 = dma.done.wait [#allocation3], 256  }
 0xe72   :  { %1127 = vsyncadd [#allocation3], 4294967040 }
 0xe73   :  { %934 = vsyncpa [#allocation3], 1 }

</bundles_post_ra>
